<compile_context>
chip_gen: v7x
topology: tpu7x:2x2x1
jax: 0.10.0
libtpu: 0.0.40
codegen_flags: <defaults>
</compile_context>

<pallas_src>
import functools

import jax
import jax.numpy as jnp
from jax.experimental import pallas as pl
from jax.experimental.pallas import tpu as pltpu

OBS_SIZE = 16
ACT_SIZE = 4
H1 = 400          # logical hidden sizes (as in the PyTorch module)
H2 = 300
H1_PAD = 512      # lane-padded hidden sizes used by the kernel
H2_PAD = 384
OUT_LANES = 128   # lane-dense output slab width


def _round_up(x, m):
    return (x + m - 1) // m * m


def ddpg_critic_kernel(x_ref, a_ref,
                       w1_ref, b1_ref,
                       w2o_ref, w2a_ref, b2_ref,
                       w3_ref, b3_ref,
                       out_ref):
    # Layer 1: obs = relu(x @ W1 + b1). bf16 MXU inputs, f32 accumulation,
    # bias-add / ReLU in f32.
    obs = jnp.dot(x_ref[...].astype(jnp.bfloat16), w1_ref[...],
                  preferred_element_type=jnp.float32)
    obs = jnp.maximum(obs + b1_ref[...], 0.0)               # (TM, H1_PAD) f32

    # Layer 2: h = relu(obs @ W2_obs + a @ W2_act + b2).
    h = jnp.dot(obs.astype(jnp.bfloat16), w2o_ref[...],
                preferred_element_type=jnp.float32)          # (TM, H2_PAD) f32
    # K=4 action contraction as 4 VPU broadcast multiply-adds (keep the MXU
    # on the big contractions only).
    a_f32 = a_ref[...].astype(jnp.float32)
    w2a = w2a_ref[...]
    for k in range(ACT_SIZE):
        h = h + a_f32[:, k:k + 1] * w2a[k:k + 1, :]
    h = jnp.maximum(h + b2_ref[...], 0.0)

    # Layer 3: q = h @ w3 + b3 as a VPU multiply + lane reduction (XLU), then
    # broadcast across the 128-lane output slab so the store is unmasked.
    q = jnp.sum(h * w3_ref[...], axis=-1, keepdims=True) + b3_ref[...]
    out_ref[...] = jnp.broadcast_to(q, out_ref.shape).astype(out_ref.dtype)


@functools.partial(jax.jit, static_argnames=("block_m",))
def ddpg_critic(x, a, params, *, block_m=256):
    """Fused DDPGCritic forward: returns Q(x, a) with shape (batch, 1)."""
    w1, b1, w2o, w2a, b2, w3, b3 = params
    batch = x.shape[0]

    tm = min(block_m, _round_up(batch, 8))
    padded = _round_up(batch, tm)
    if padded != batch:
        x = jnp.pad(x, ((0, padded - batch), (0, 0)))
        a = jnp.pad(a, ((0, padded - batch), (0, 0)))
    grid = (padded // tm,)

    flops = 2 * padded * (OBS_SIZE * H1_PAD + H1_PAD * H2_PAD
                          + ACT_SIZE * H2_PAD + H2_PAD)
    bytes_accessed = (x.size * x.dtype.itemsize + a.size * a.dtype.itemsize
                      + sum(int(p.size) * p.dtype.itemsize for p in params)
                      + padded * OUT_LANES * 4)

    out = pl.pallas_call(
        ddpg_critic_kernel,
        out_shape=jax.ShapeDtypeStruct((padded, OUT_LANES), jnp.float32),
        grid_spec=pltpu.PrefetchScalarGridSpec(
            num_scalar_prefetch=0,
            grid=grid,
            in_specs=[
                # batch-tiled activations
                pl.BlockSpec((tm, OBS_SIZE), lambda i: (i, 0)),
                pl.BlockSpec((tm, ACT_SIZE), lambda i: (i, 0)),
                # weights / biases: constant index_map -> DMA'd once, resident
                pl.BlockSpec((OBS_SIZE, H1_PAD), lambda i: (0, 0)),
                pl.BlockSpec((1, H1_PAD), lambda i: (0, 0)),
                pl.BlockSpec((H1_PAD, H2_PAD), lambda i: (0, 0)),
                pl.BlockSpec((ACT_SIZE, H2_PAD), lambda i: (0, 0)),
                pl.BlockSpec((1, H2_PAD), lambda i: (0, 0)),
                pl.BlockSpec((1, H2_PAD), lambda i: (0, 0)),
                pl.BlockSpec((1, 1), lambda i: (0, 0)),
            ],
            out_specs=pl.BlockSpec((tm, OUT_LANES), lambda i: (i, 0)),
        ),
        compiler_params=pltpu.CompilerParams(
            dimension_semantics=("parallel",)),
        cost_estimate=pl.CostEstimate(
            flops=flops, transcendentals=0, bytes_accessed=bytes_accessed),
    )(x, a, w1, b1, w2o, w2a, b2, w3, b3)

    return out[:batch, :1]


def init_params(key):
    """Synthetic weights matching the PyTorch module's shapes.

    Returns (raw_params, kernel_params):
      raw_params    -- unpadded f32 weights in [in, out] layout (reference).
      kernel_params -- lane-padded (400->512, 300->384) weights; MXU operands
                       stored in bf16, everything touched by the VPU in f32.
    """
    ks = jax.random.split(key, 6)
    w1 = jax.random.normal(ks[0], (OBS_SIZE, H1), jnp.float32) * 0.05
    b1 = jax.random.normal(ks[1], (H1,), jnp.float32) * 0.05
    w2 = jax.random.normal(ks[2], (H1 + ACT_SIZE, H2), jnp.float32) * 0.05
    b2 = jax.random.normal(ks[3], (H2,), jnp.float32) * 0.05
    w3 = jax.random.normal(ks[4], (H2, 1), jnp.float32) * 0.05
    b3 = jax.random.normal(ks[5], (1,), jnp.float32) * 0.05
    raw = (w1, b1, w2, b2, w3, b3)

    # Zero-padded, kernel-layout parameters (padding is exactly zero).
    w1_p = jnp.zeros((OBS_SIZE, H1_PAD), jnp.float32).at[:, :H1].set(w1)
    b1_p = jnp.zeros((1, H1_PAD), jnp.float32).at[0, :H1].set(b1)
    w2o_p = jnp.zeros((H1_PAD, H2_PAD), jnp.float32).at[:H1, :H2].set(w2[:H1])
    w2a_p = jnp.zeros((ACT_SIZE, H2_PAD), jnp.float32).at[:, :H2].set(w2[H1:])
    b2_p = jnp.zeros((1, H2_PAD), jnp.float32).at[0, :H2].set(b2)
    w3_p = jnp.zeros((1, H2_PAD), jnp.float32).at[0, :H2].set(w3[:, 0])
    b3_p = b3.reshape(1, 1)

    kernel_params = (w1_p.astype(jnp.bfloat16), b1_p,
                     w2o_p.astype(jnp.bfloat16), w2a_p, b2_p,
                     w3_p, b3_p)
    return raw, kernel_params


def reference(x, a, raw_params):
    """Pure-JAX f32 reference matching the PyTorch forward."""
    w1, b1, w2, b2, w3, b3 = raw_params
    obs = jnp.maximum(x @ w1 + b1, 0.0)
    cat = jnp.concatenate([obs, a], axis=1)
    h = jnp.maximum(cat @ w2 + b2, 0.0)
    return h @ w3 + b3


if __name__ == "__main__":
    key = jax.random.PRNGKey(0)
    kp, kx, ka = jax.random.split(key, 3)
    raw_params, kernel_params = init_params(kp)

    # Small case (batch=2): single grid step, exercises batch padding.
    batch = 2
    x = jax.random.normal(kx, (batch, OBS_SIZE), jnp.float32)
    a = jax.random.normal(ka, (batch, ACT_SIZE), jnp.float32)
    out = jax.block_until_ready(ddpg_critic(x, a, kernel_params))
    ref = reference(x, a, raw_params)
    assert out.shape == (batch, 1)
    # bf16 MXU inputs -> loosened tolerance vs. pure-f32 reference.
    assert jnp.allclose(out, ref, atol=5e-2, rtol=5e-2)

    # Larger, non-tile-multiple batch: exercises multi-step grid + pipelining.
    batch2 = 300
    x2 = jax.random.normal(kx, (batch2, OBS_SIZE), jnp.float32)
    a2 = jax.random.normal(ka, (batch2, ACT_SIZE), jnp.float32)
    out2 = jax.block_until_ready(ddpg_critic(x2, a2, kernel_params))
    ref2 = reference(x2, a2, raw_params)
    assert out2.shape == (batch2, 1)
    assert jnp.allclose(out2, ref2, atol=5e-2, rtol=5e-2)

    print("KERNEL_OK")
</pallas_src>

<mosaic_0001>
module attributes {stable_mosaic.version = 11 : i64} {
  func.func @ddpg_critic_kernel(%arg0: i32, %arg1: memref<8x16xf32, #tpu.memory_space<vmem>>, %arg2: memref<8x4xf32, #tpu.memory_space<vmem>>, %arg3: memref<16x512xbf16, #tpu.memory_space<vmem>>, %arg4: memref<1x512xf32, #tpu.memory_space<vmem>>, %arg5: memref<512x384xbf16, #tpu.memory_space<vmem>>, %arg6: memref<4x384xf32, #tpu.memory_space<vmem>>, %arg7: memref<1x384xf32, #tpu.memory_space<vmem>>, %arg8: memref<1x384xf32, #tpu.memory_space<vmem>>, %arg9: memref<1x1xf32, #tpu.memory_space<vmem>>, %arg10: memref<8x128xf32, #tpu.memory_space<vmem>>) attributes {dimension_semantics = [#tpu.dimension_semantics<parallel>], iteration_bounds = array<i64: 1>, scalar_prefetch = 0 : i64, scratch_operands = 0 : i64, tpu.core_type = #tpu.core_type<tc>, window_params = [{transform_indices = @transform_0, window_bounds = array<i64: 8, 16>}, {transform_indices = @transform_1, window_bounds = array<i64: 8, 4>}, {pipeline_mode = #tpu.pipeline_mode<synchronous>, transform_indices = @transform_2, window_bounds = array<i64: 16, 512>}, {pipeline_mode = #tpu.pipeline_mode<synchronous>, transform_indices = @transform_3, window_bounds = array<i64: 1, 512>}, {pipeline_mode = #tpu.pipeline_mode<synchronous>, transform_indices = @transform_4, window_bounds = array<i64: 512, 384>}, {pipeline_mode = #tpu.pipeline_mode<synchronous>, transform_indices = @transform_5, window_bounds = array<i64: 4, 384>}, {pipeline_mode = #tpu.pipeline_mode<synchronous>, transform_indices = @transform_6, window_bounds = array<i64: 1, 384>}, {pipeline_mode = #tpu.pipeline_mode<synchronous>, transform_indices = @transform_7, window_bounds = array<i64: 1, 384>}, {pipeline_mode = #tpu.pipeline_mode<synchronous>, transform_indices = @transform_8, window_bounds = array<i64: 1, 1>}, {transform_indices = @transform_9, window_bounds = array<i64: 8, 128>}]} {
    %c0 = arith.constant 0 : index
    %c0_0 = arith.constant 0 : index
    %0 = vector.load %arg1[%c0, %c0_0] : memref<8x16xf32, #tpu.memory_space<vmem>>, vector<8x16xf32>
    %1 = arith.truncf %0 : vector<8x16xf32> to vector<8x16xbf16>
    %c0_1 = arith.constant 0 : index
    %c0_2 = arith.constant 0 : index
    %2 = vector.load %arg3[%c0_1, %c0_2] : memref<16x512xbf16, #tpu.memory_space<vmem>>, vector<16x512xbf16>
    %cst = arith.constant dense<0.000000e+00> : vector<8x512xf32>
    %3 = tpu.matmul %1, %2, %cst {dimension_numbers = #tpu.dot_dimension_numbers<[1], [0], [0], [1], [0, 0, 1, 1], [], []>} : vector<8x16xbf16>, vector<16x512xbf16>, vector<8x512xf32> -> vector<8x512xf32>
    %c0_3 = arith.constant 0 : index
    %c0_4 = arith.constant 0 : index
    %4 = vector.load %arg4[%c0_3, %c0_4] : memref<1x512xf32, #tpu.memory_space<vmem>>, vector<1x512xf32>
    %5 = vector.broadcast %4 : vector<1x512xf32> to vector<8x512xf32>
    %6 = arith.addf %3, %5 : vector<8x512xf32>
    %cst_5 = arith.constant 0.000000e+00 : f32
    %7 = vector.broadcast %cst_5 : f32 to vector<8x512xf32>
    %8 = arith.maximumf %6, %7 : vector<8x512xf32>
    %9 = arith.truncf %8 : vector<8x512xf32> to vector<8x512xbf16>
    %c0_6 = arith.constant 0 : index
    %c0_7 = arith.constant 0 : index
    %10 = vector.load %arg5[%c0_6, %c0_7] : memref<512x384xbf16, #tpu.memory_space<vmem>>, vector<512x384xbf16>
    %cst_8 = arith.constant dense<0.000000e+00> : vector<8x384xf32>
    %11 = tpu.matmul %9, %10, %cst_8 {dimension_numbers = #tpu.dot_dimension_numbers<[1], [0], [0], [1], [0, 0, 1, 1], [], []>} : vector<8x512xbf16>, vector<512x384xbf16>, vector<8x384xf32> -> vector<8x384xf32>
    %c0_9 = arith.constant 0 : index
    %c0_10 = arith.constant 0 : index
    %12 = vector.load %arg2[%c0_9, %c0_10] : memref<8x4xf32, #tpu.memory_space<vmem>>, vector<8x4xf32>
    %c0_11 = arith.constant 0 : index
    %c0_12 = arith.constant 0 : index
    %13 = vector.load %arg6[%c0_11, %c0_12] : memref<4x384xf32, #tpu.memory_space<vmem>>, vector<4x384xf32>
    %14 = vector.extract_strided_slice %12 {offsets = [0, 0], sizes = [8, 1], strides = [1, 1]} : vector<8x4xf32> to vector<8x1xf32>
    %15 = vector.extract_strided_slice %13 {offsets = [0, 0], sizes = [1, 384], strides = [1, 1]} : vector<4x384xf32> to vector<1x384xf32>
    %16 = vector.broadcast %14 : vector<8x1xf32> to vector<8x384xf32>
    %17 = vector.broadcast %15 : vector<1x384xf32> to vector<8x384xf32>
    %18 = arith.mulf %16, %17 : vector<8x384xf32>
    %19 = arith.addf %11, %18 : vector<8x384xf32>
    %20 = vector.extract_strided_slice %12 {offsets = [0, 1], sizes = [8, 1], strides = [1, 1]} : vector<8x4xf32> to vector<8x1xf32>
    %21 = vector.extract_strided_slice %13 {offsets = [1, 0], sizes = [1, 384], strides = [1, 1]} : vector<4x384xf32> to vector<1x384xf32>
    %22 = vector.broadcast %20 : vector<8x1xf32> to vector<8x384xf32>
    %23 = vector.broadcast %21 : vector<1x384xf32> to vector<8x384xf32>
    %24 = arith.mulf %22, %23 : vector<8x384xf32>
    %25 = arith.addf %19, %24 : vector<8x384xf32>
    %26 = vector.extract_strided_slice %12 {offsets = [0, 2], sizes = [8, 1], strides = [1, 1]} : vector<8x4xf32> to vector<8x1xf32>
    %27 = vector.extract_strided_slice %13 {offsets = [2, 0], sizes = [1, 384], strides = [1, 1]} : vector<4x384xf32> to vector<1x384xf32>
    %28 = vector.broadcast %26 : vector<8x1xf32> to vector<8x384xf32>
    %29 = vector.broadcast %27 : vector<1x384xf32> to vector<8x384xf32>
    %30 = arith.mulf %28, %29 : vector<8x384xf32>
    %31 = arith.addf %25, %30 : vector<8x384xf32>
    %32 = vector.extract_strided_slice %12 {offsets = [0, 3], sizes = [8, 1], strides = [1, 1]} : vector<8x4xf32> to vector<8x1xf32>
    %33 = vector.extract_strided_slice %13 {offsets = [3, 0], sizes = [1, 384], strides = [1, 1]} : vector<4x384xf32> to vector<1x384xf32>
    %34 = vector.broadcast %32 : vector<8x1xf32> to vector<8x384xf32>
    %35 = vector.broadcast %33 : vector<1x384xf32> to vector<8x384xf32>
    %36 = arith.mulf %34, %35 : vector<8x384xf32>
    %37 = arith.addf %31, %36 : vector<8x384xf32>
    %c0_13 = arith.constant 0 : index
    %c0_14 = arith.constant 0 : index
    %38 = vector.load %arg7[%c0_13, %c0_14] : memref<1x384xf32, #tpu.memory_space<vmem>>, vector<1x384xf32>
    %39 = vector.broadcast %38 : vector<1x384xf32> to vector<8x384xf32>
    %40 = arith.addf %37, %39 : vector<8x384xf32>
    %cst_15 = arith.constant 0.000000e+00 : f32
    %41 = vector.broadcast %cst_15 : f32 to vector<8x384xf32>
    %42 = arith.maximumf %40, %41 : vector<8x384xf32>
    %c0_16 = arith.constant 0 : index
    %c0_17 = arith.constant 0 : index
    %43 = vector.load %arg8[%c0_16, %c0_17] : memref<1x384xf32, #tpu.memory_space<vmem>>, vector<1x384xf32>
    %44 = vector.broadcast %43 : vector<1x384xf32> to vector<8x384xf32>
    %45 = arith.mulf %42, %44 : vector<8x384xf32>
    %cst_18 = arith.constant dense<0.000000e+00> : vector<8xf32>
    %46 = vector.multi_reduction <add>, %45, %cst_18 [1] : vector<8x384xf32> to vector<8xf32>
    %47 = vector.shape_cast %46 : vector<8xf32> to vector<8x1xf32>
    %c0_19 = arith.constant 0 : index
    %c0_20 = arith.constant 0 : index
    %48 = vector.load %arg9[%c0_19, %c0_20] : memref<1x1xf32, #tpu.memory_space<vmem>>, vector<1x1xf32>
    %49 = vector.broadcast %48 : vector<1x1xf32> to vector<8x1xf32>
    %50 = arith.addf %47, %49 : vector<8x1xf32>
    %51 = vector.shape_cast %50 : vector<8x1xf32> to vector<8x1xf32>
    %52 = vector.broadcast %51 : vector<8x1xf32> to vector<8x128xf32>
    %c0_21 = arith.constant 0 : index
    %c0_22 = arith.constant 0 : index
    %53 = vector.load %arg10[%c0_21, %c0_22] : memref<8x128xf32, #tpu.memory_space<vmem>>, vector<8x128xf32>
    tpu.vector_store %arg10[%c0_21, %c0_22], %52 {strides = array<i32>} : memref<8x128xf32, #tpu.memory_space<vmem>>, vector<8x128xf32>,
    return
  }
  func.func @transform_0(%arg0: i32) -> (i32, i32) {
    %c0_i32 = arith.constant 0 : i32
    %c0_i32_0 = arith.constant 0 : i32
    return %arg0, %c0_i32 : i32, i32
  }
  func.func @transform_1(%arg0: i32) -> (i32, i32) {
    %c0_i32 = arith.constant 0 : i32
    %c0_i32_0 = arith.constant 0 : i32
    return %arg0, %c0_i32 : i32, i32
  }
  func.func @transform_2(%arg0: i32) -> (i32, i32) {
    %c0_i32 = arith.constant 0 : i32
    %c0_i32_0 = arith.constant 0 : i32
    %c0_i32_1 = arith.constant 0 : i32
    return %c0_i32, %c0_i32_0 : i32, i32
  }
  func.func @transform_3(%arg0: i32) -> (i32, i32) {
    %c0_i32 = arith.constant 0 : i32
    %c0_i32_0 = arith.constant 0 : i32
    %c0_i32_1 = arith.constant 0 : i32
    return %c0_i32, %c0_i32_0 : i32, i32
  }
  func.func @transform_4(%arg0: i32) -> (i32, i32) {
    %c0_i32 = arith.constant 0 : i32
    %c0_i32_0 = arith.constant 0 : i32
    %c0_i32_1 = arith.constant 0 : i32
    return %c0_i32, %c0_i32_0 : i32, i32
  }
  func.func @transform_5(%arg0: i32) -> (i32, i32) {
    %c0_i32 = arith.constant 0 : i32
    %c0_i32_0 = arith.constant 0 : i32
    %c0_i32_1 = arith.constant 0 : i32
    return %c0_i32, %c0_i32_0 : i32, i32
  }
  func.func @transform_6(%arg0: i32) -> (i32, i32) {
    %c0_i32 = arith.constant 0 : i32
    %c0_i32_0 = arith.constant 0 : i32
    %c0_i32_1 = arith.constant 0 : i32
    return %c0_i32, %c0_i32_0 : i32, i32
  }
  func.func @transform_7(%arg0: i32) -> (i32, i32) {
    %c0_i32 = arith.constant 0 : i32
    %c0_i32_0 = arith.constant 0 : i32
    %c0_i32_1 = arith.constant 0 : i32
    return %c0_i32, %c0_i32_0 : i32, i32
  }
  func.func @transform_8(%arg0: i32) -> (i32, i32) {
    %c0_i32 = arith.constant 0 : i32
    %c0_i32_0 = arith.constant 0 : i32
    %c0_i32_1 = arith.constant 0 : i32
    return %c0_i32, %c0_i32_0 : i32, i32
  }
  func.func @transform_9(%arg0: i32) -> (i32, i32) {
    %c0_i32 = arith.constant 0 : i32
    %c0_i32_0 = arith.constant 0 : i32
    return %arg0, %c0_i32 : i32, i32
  }
}

</mosaic_0001>

<bundles_post_ra>
// kernel: ddpg_critic.1
= control target key start
LH: loop header
LB: loop body
LE: loop exit
PB: predicated region body
PF: predicated region fallthrough
CT: control target
= control target key end

     0   :  { %s1770_s0 = inlined_call_operand.vmem [shape: f32[8,16], index: 0, kind: input, shape index: {}]   ;;  %s1771_s1 = inlined_call_operand.vmem [shape: f32[8,4], index: 1, kind: input, shape index: {}]   ;;  %s1772_s2 = inlined_call_operand.vmem [shape: bf16[16,512], index: 2, kind: input, shape index: {}]   ;;  %s1773_s3 = inlined_call_operand.hbm [shape: f32[1,512], index: 3, kind: input, shape index: {}]   ;;  %s1774_s4 = inlined_call_operand.hbm [shape: bf16[512,384], index: 4, kind: input, shape index: {}]   ;;  %s1775_s5 = inlined_call_operand.vmem [shape: f32[4,384], index: 5, kind: input, shape index: {}]   ;;  %s1776_s6 = inlined_call_operand.vmem [shape: f32[1,384], index: 6, kind: input, shape index: {}]   ;;  %s1777_s7 = inlined_call_operand.vmem [shape: f32[1,384], index: 7, kind: input, shape index: {}]   ;;  %s1778_s8 = inlined_call_operand.<no memory space> [shape: f32[1,1], index: 8, kind: input, shape index: {}]   ;;  %s1779_s9 = inlined_call_operand.vmem [shape: f32[8,128], index: 9, kind: output, shape index: {}]  }
   0x1   :  { %v14_v0 = vstv %s1778_s8 }
   0x2   :  { %15 = vst [vmem:[#allocation2] sm:$0x1] %v14_v0 }
   0x3   :  { %16 = vsyncpa [#allocation4], 0 }
   0x4   :  { %17 = vsyncpa [#allocation6], 0  ;;  %s1565_s11 = smov [#allocation3]   ;;  %s1566_s13 = smov [#allocation5]  }
   0x5   :  { %s30_s12 = sshll.u32 %s1565_s11, 4  ;;  %s39_s14 = sshll.u32 %s1566_s13, 4  ;;  %s31_s12 = int_to_ptr.vmem [resolvable:$true] %s30_s12  ;;  %s1626_s14 = int_to_ptr.vmem [resolvable:$true] %s39_s14 }
   0x6   :  { %s1517_s17 = scalar_lea.hbm %s1773_s3, 64 }
   0x7   :  { %p1518_p0 = scmp.ne.s32.totalorder %s1773_s3, %s1517_s17  ;;  %p1521_p1 = scmp.lt.u32.totalorder %s1517_s17, %s1773_s3 }
   0x9   :  { %p1523_p2 = pnand %p1521_p1, %p1518_p0 }
   0xb   :  { %1526 = shalt.err (!%p1523_p2)
}
   0xc   :  { %s1527_s21 = scalar_lea.vmem %s31_s12, 64  ;;  %p1532_p4 = scmp.lt.s32.totalorder %s31_s12, %s31_s12 }
   0xd   :  { %p1528_p3 = scmp.ne.s32.totalorder %s31_s12, %s1527_s21  ;;  %p1533_p5 = scmp.lt.s32.totalorder %s1527_s21, %s1527_s21 }
   0xf   :  { %p1534_p6 = por %p1533_p5, %p1532_p4 }
  0x11   :  { %p1535_p7 = pnand %p1534_p6, %p1528_p3 }
  0x13   :  { %1538 = shalt.err (!%p1535_p7)
}
  0x14   :  { %33 = dma.hbm_to_vmem [thread:$0]  %s1773_s3, 64, %s31_s12, [#allocation4]  }
  0x15   :  { %s1539_s26 = scalar_lea.hbm %s1774_s4, 12288 }
  0x16   :  { %p1540_p8 = scmp.ne.s32.totalorder %s1774_s4, %s1539_s26  ;;  %p1543_p9 = scmp.lt.u32.totalorder %s1539_s26, %s1774_s4 }
  0x18   :  { %p1545_p10 = pnand %p1543_p9, %p1540_p8 }
  0x1a   :  { %1548 = shalt.err (!%p1545_p10)
}
  0x1b   :  { %s1549_s10 = scalar_lea.vmem %s1626_s14, 12288  ;;  %p1554_p12 = scmp.lt.s32.totalorder %s1626_s14, %s1626_s14 }
  0x1c   :  { %p1550_p11 = scmp.ne.s32.totalorder %s1626_s14, %s1549_s10  ;;  %p1555_p13 = scmp.lt.s32.totalorder %s1549_s10, %s1549_s10 }
  0x1e   :  { %p1556_p0 = por %p1555_p13, %p1554_p12 }
  0x20   :  { %p1557_p1 = pnand %p1556_p0, %p1550_p11 }
  0x22   :  { %1560 = shalt.err (!%p1557_p1)
}
  0x23   :  { %s1567_s3 = smov 192   ;;  %s1568_s11 = smov 12  }
  0x24   :  { %45 = dma.hbm_to_vmem [thread:$0]  %s1774_s4, 12288, %s1626_s14, [#allocation6], %s1567_s3, %s1567_s3, %s1568_s11  }
  0x25   :  { %1561 = dma.done.wait [#allocation4], 64  }
  0x26   :  { %1562 = vsyncadd [#allocation4], 4294967232 }
  0x27   :  { %1563 = dma.done.wait [#allocation6], 12288  }
  0x28   :  { %1564 = vsyncadd [#allocation6], 4294955008  ;;  %v1569_v1 = vmov 0   ;;  %v1383_v2 = vld [vmem:[%s1772_s2 + $0x4] ss:$16 sps:$4 sm:$0xff]   ;;  %vm109_vm0 = vcmask 130048  }
  0x29   :  { %145 = vmatprep.mubr.bf16.mxu0 %v1569_v1  ;;  %186 = vmatprep.mubr.bf16.mxu1 %v1569_v1  ;;  %v1385_v3 = vld [vmem:[%s1772_s2 + $0xc] ss:$16 sps:$4 sm:$0xff]   ;;  %v1387_v4 = vld [vmem:[%s1772_s2] ss:$16 sps:$4 sm:$0xff]   ;;  %v1388_v5 = vld [vmem:[%s1772_s2 + $0x8] ss:$16 sps:$4 sm:$0xff]  }
  0x2a   :  { %1378 = vset.pattern.permute.xlu0 %v1569_v1  ;;  %113 = vmatprep.subr.bf16.mxu0 %v1383_v2  ;;  %v61_v6 = vld [vmem:[%s1770_s0] sm:$0xff]  ;;  %v1391_v9 = vld [vmem:[#allocation5 + $0x4] ss:$12 sps:$4 sm:$0xff]   ;;  %v1407_v22 = vld [vmem:[#allocation5 + $0x48] ss:$12 sps:$4 sm:$0xff]  }
  0x2b   :  { %154 = vmatprep.subr.bf16.mxu1 %v1385_v3  ;;  %v62_v7 = vpack.c.bf16 %v61_v6, %v61_v6  ;;  %v1389_v8 = vld [vmem:[#allocation5] ss:$12 sps:$4 sm:$0xff]   ;;  %114 = vmatpush1.bf16.msra.mxu0 %v1387_v4  ;;  %v1394_v11 = vld [vmem:[#allocation5 + $0x184] ss:$12 sps:$4 sm:$0xff]   ;;  %v1397_v12 = vld [vmem:[#allocation5 + $0x1c] ss:$12 sps:$4 sm:$0xff]  }
  0x2c   :  { %155 = vmatpush1.bf16.msra.mxu1 %v1388_v5  ;;  %v1392_v10 = vld [vmem:[#allocation5 + $0x180] ss:$12 sps:$4 sm:$0xff]   ;;  %883 = vmatprep.subr.bf16.mxu0 %v1391_v9  ;;  %v1395_v13 = vld [vmem:[#allocation5 + $0x18] ss:$12 sps:$4 sm:$0xff]   ;;  %v1400_v14 = vld [vmem:[#allocation5 + $0x19c] ss:$12 sps:$4 sm:$0xff]  }
  0x2d   :  { %924 = vmatprep.subr.bf16.mxu1 %v1394_v11  ;;  %v1398_v15 = vld [vmem:[#allocation5 + $0x198] ss:$12 sps:$4 sm:$0xff]   ;;  %v1403_v16 = vld [vmem:[#allocation5 + $0x34] ss:$12 sps:$4 sm:$0xff]   ;;  %v1401_v18 = vld [vmem:[#allocation5 + $0x30] ss:$12 sps:$4 sm:$0xff]  }
  0x2e   :  { %1227 = vmatmul.mubr.msk.bf16.vlgmr.msra.gmra.mrb[0].mxu0 %vm109_vm0, %v62_v7  ;;  %v1406_v17 = vld [vmem:[#allocation5 + $0x1b4] ss:$12 sps:$4 sm:$0xff]   ;;  %v1404_v19 = vld [vmem:[#allocation5 + $0x1b0] ss:$12 sps:$4 sm:$0xff]   ;;  %v1409_v20 = vld [vmem:[#allocation5 + $0x4c] ss:$12 sps:$4 sm:$0xff]  }
  0x2f   :  { %1228 = vmatmul.mubr.msk.bf16.vlgmr.msra.gmra.mrb[0].mxu1 %vm109_vm0, %v62_v7  ;;  %884 = vmatpush1.bf16.msra.mxu0 %v1389_v8  ;;  %v1412_v21 = vld [vmem:[#allocation5 + $0x1cc] ss:$12 sps:$4 sm:$0xff]   ;;  %v1410_v23 = vld [vmem:[#allocation5 + $0x1c8] ss:$12 sps:$4 sm:$0xff]   ;;  %v1415_v24 = vld [vmem:[#allocation5 + $0x64] ss:$12 sps:$4 sm:$0xff]  }
  0x30   :  { %925 = vmatpush1.bf16.msra.mxu1 %v1392_v10  ;;  %885 = vmatprep.subr.bf16.mxu0 %v1397_v12  ;;  %v1418_v25 = vld [vmem:[#allocation5 + $0x1e4] ss:$12 sps:$4 sm:$0xff]   ;;  %v1413_v26 = vld [vmem:[#allocation5 + $0x60] ss:$12 sps:$4 sm:$0xff]   ;;  %v1421_v28 = vld [vmem:[#allocation5 + $0x7c] ss:$12 sps:$4 sm:$0xff]  }
  0x31   :  { %926 = vmatprep.subr.bf16.mxu1 %v1400_v14  ;;  %v1416_v27 = vld [vmem:[#allocation5 + $0x1e0] ss:$12 sps:$4 sm:$0xff]   ;;  %v1424_v29 = vld [vmem:[#allocation5 + $0x1fc] ss:$12 sps:$4 sm:$0xff]   ;;  %v1419_v30 = vld [vmem:[#allocation5 + $0x78] ss:$12 sps:$4 sm:$0xff]  }
  0x32   :  { %v1422_v31 = vld [vmem:[#allocation5 + $0x1f8] ss:$12 sps:$4 sm:$0xff]   ;;  %v1427_v32 = vld [vmem:[#allocation5 + $0x94] ss:$12 sps:$4 sm:$0xff]   ;;  %v1425_v34 = vld [vmem:[#allocation5 + $0x90] ss:$12 sps:$4 sm:$0xff]  }
  0x33   :  { %886 = vmatpush1.bf16.msra.mxu0 %v1395_v13  ;;  %v1430_v33 = vld [vmem:[#allocation5 + $0x214] ss:$12 sps:$4 sm:$0xff]   ;;  %v1428_v35 = vld [vmem:[#allocation5 + $0x210] ss:$12 sps:$4 sm:$0xff]   ;;  %v1433_v36 = vld [vmem:[#allocation5 + $0xac] ss:$12 sps:$4 sm:$0xff]  }
  0x34   :  { %927 = vmatpush1.bf16.msra.mxu1 %v1398_v15  ;;  %887 = vmatprep.subr.bf16.mxu0 %v1403_v16  ;;  %v1436_v37 = vld [vmem:[#allocation5 + $0x22c] ss:$12 sps:$4 sm:$0xff]   ;;  %v1431_v38 = vld [vmem:[#allocation5 + $0xa8] ss:$12 sps:$4 sm:$0xff]   ;;  %v1439_v40 = vld [vmem:[#allocation5 + $0xc4] ss:$12 sps:$4 sm:$0xff]   ;;  %v69_v15 = vlaneseq }
  0x35   :  { %928 = vmatprep.subr.bf16.mxu1 %v1406_v17  ;;  %v1434_v39 = vld [vmem:[#allocation5 + $0x228] ss:$12 sps:$4 sm:$0xff]   ;;  %v1442_v41 = vld [vmem:[#allocation5 + $0x244] ss:$12 sps:$4 sm:$0xff]   ;;  %v1437_v42 = vld [vmem:[#allocation5 + $0xc0] ss:$12 sps:$4 sm:$0xff]  }
  0x36   :  { %v1440_v43 = vld [vmem:[#allocation5 + $0x240] ss:$12 sps:$4 sm:$0xff]   ;;  %v1445_v44 = vld [vmem:[#allocation5 + $0xdc] ss:$12 sps:$4 sm:$0xff]   ;;  %v1443_v45 = vld [vmem:[#allocation5 + $0xd8] ss:$12 sps:$4 sm:$0xff]  }
  0x37   :  { %888 = vmatpush1.bf16.msra.mxu0 %v1401_v18  ;;  %v1448_v46 = vld [vmem:[#allocation5 + $0x25c] ss:$12 sps:$4 sm:$0xff]   ;;  %v1446_v47 = vld [vmem:[#allocation5 + $0x258] ss:$12 sps:$4 sm:$0xff]   ;;  %v1451_v48 = vld [vmem:[#allocation5 + $0xf4] ss:$12 sps:$4 sm:$0xff]  }
  0x38   :  { %929 = vmatpush1.bf16.msra.mxu1 %v1404_v19  ;;  %889 = vmatprep.subr.bf16.mxu0 %v1409_v20  ;;  %v1454_v49 = vld [vmem:[#allocation5 + $0x274] ss:$12 sps:$4 sm:$0xff]   ;;  %v1449_v50 = vld [vmem:[#allocation5 + $0xf0] ss:$12 sps:$4 sm:$0xff]   ;;  %v1457_v52 = vld [vmem:[#allocation5 + $0x10c] ss:$12 sps:$4 sm:$0xff]  }
  0x39   :  { %930 = vmatprep.subr.bf16.mxu1 %v1412_v21  ;;  %v1452_v51 = vld [vmem:[#allocation5 + $0x270] ss:$12 sps:$4 sm:$0xff]   ;;  %v1460_v53 = vld [vmem:[#allocation5 + $0x28c] ss:$12 sps:$4 sm:$0xff]   ;;  %v1455_v54 = vld [vmem:[#allocation5 + $0x108] ss:$12 sps:$4 sm:$0xff]  }
  0x3a   :  { %v1458_v55 = vld [vmem:[#allocation5 + $0x288] ss:$12 sps:$4 sm:$0xff]   ;;  %v1463_v56 = vld [vmem:[#allocation5 + $0x124] ss:$12 sps:$4 sm:$0xff]   ;;  %v1461_v58 = vld [vmem:[#allocation5 + $0x120] ss:$12 sps:$4 sm:$0xff]  }
  0x3b   :  { %890 = vmatpush1.bf16.msra.mxu0 %v1407_v22  ;;  %v1466_v57 = vld [vmem:[#allocation5 + $0x2a4] ss:$12 sps:$4 sm:$0xff]   ;;  %v1464_v59 = vld [vmem:[#allocation5 + $0x2a0] ss:$12 sps:$4 sm:$0xff]   ;;  %v1469_v60 = vld [vmem:[#allocation5 + $0x13c] ss:$12 sps:$4 sm:$0xff]  }
  0x3c   :  { %931 = vmatpush1.bf16.msra.mxu1 %v1410_v23  ;;  %891 = vmatprep.subr.bf16.mxu0 %v1415_v24  ;;  %v1472_v61 = vld [vmem:[#allocation5 + $0x2bc] ss:$12 sps:$4 sm:$0xff]   ;;  %v1467_v62 = vld [vmem:[#allocation5 + $0x138] ss:$12 sps:$4 sm:$0xff]   ;;  %v1475_v0 = vld [vmem:[#allocation5 + $0x154] ss:$12 sps:$4 sm:$0xff]  }
  0x3d   :  { %932 = vmatprep.subr.bf16.mxu1 %v1418_v25  ;;  %v1470_v63 = vld [vmem:[#allocation5 + $0x2b8] ss:$12 sps:$4 sm:$0xff]   ;;  %v1478_v2 = vld [vmem:[#allocation5 + $0x2d4] ss:$12 sps:$4 sm:$0xff]   ;;  %v1473_v3 = vld [vmem:[#allocation5 + $0x150] ss:$12 sps:$4 sm:$0xff]  }
  0x3e   :  { %v1476_v4 = vld [vmem:[#allocation5 + $0x2d0] ss:$12 sps:$4 sm:$0xff]   ;;  %v1481_v5 = vld [vmem:[#allocation5 + $0x16c] ss:$12 sps:$4 sm:$0xff]   ;;  %v1479_v7 = vld [vmem:[#allocation5 + $0x168] ss:$12 sps:$4 sm:$0xff]  }
  0x3f   :  { %892 = vmatpush1.bf16.msra.mxu0 %v1413_v26  ;;  %v1484_v6 = vld [vmem:[#allocation5 + $0x2ec] ss:$12 sps:$4 sm:$0xff]   ;;  %v1482_v8 = vld [vmem:[#allocation5 + $0x2e8] ss:$12 sps:$4 sm:$0xff]   ;;  %v1570_v12 = vmov 2   ;;  %v1571_v13 = vmov 1  }
  0x40   :  { %933 = vmatpush1.bf16.msra.mxu1 %v1416_v27  ;;  %893 = vmatprep.subr.bf16.mxu0 %v1421_v28  ;;  %v1485_v9 = vld [vmem:[#allocation5 + $0xc8] ss:$12 sps:$4 sm:$0xff]   ;;  %v331_v11 = vld [vmem:[%s1771_s1] sm:$0xff]  ;;  %v1572_v14 = vmov 3   ;;  %v1679_v16 = vshrl.u32 %v69_v15, 7 }
  0x41   :  { %934 = vmatprep.subr.bf16.mxu1 %v1424_v29  ;;  %v1486_v10 = vld [vmem:[#allocation5 + $0x248] ss:$12 sps:$4 sm:$0xff]   ;;  %336 = vperm.xlu0 %1378, %v331_v11   ;;  %v67_v19 = vld [vmem:[#allocation3] sm:$0xf] }
  0x42   :  { %1380 = vset.pattern.permute.xlu1 %v1570_v12  ;;  %v1682_v17 = vsub.s32 0, %v1679_v16  ;;  %v1685_v18 = vsub.s32 2, %v1679_v16  ;;  %v1688_v20 = vsub.s32 1, %v1679_v16  ;;  %v1691_v21 = vsub.s32 3, %v1679_v16  ;;  %v332_v12 = vld [vmem:[%s1775_s5] sm:$0xff] }
  0x43   :  { %894 = vmatpush1.bf16.msra.mxu0 %v1419_v30  ;;  %1083 = vperm.xlu1 %1380, %v331_v11  }
  0x44   :  { %935 = vmatpush1.bf16.msra.mxu1 %v1422_v31  ;;  %895 = vmatprep.subr.bf16.mxu0 %v1427_v32  ;;  %v72_v22 = vrot.slane %v67_v19, %v1682_v17  ;;  %v76_v23 = vrot.slane %v67_v19, %v1688_v20  ;;  %v84_v24 = vrot.slane %v67_v19, %v1691_v21 }
  0x45   :  { %936 = vmatprep.subr.bf16.mxu1 %v1430_v33  ;;  %1379 = vset.pattern.permute.xlu0 %v1571_v13  ;;  %v347_v13 = vsub.s32 4, %v1679_v16 }
  0x46   :  { %1046 = vperm.xlu0 %1379, %v331_v11  }
  0x47   :  { %896 = vmatpush1.bf16.msra.mxu0 %v1425_v34  ;;  %1381 = vset.pattern.permute.xlu1 %v1572_v14  ;;  %v344_v14 = vrot.slane %v332_v12, %v1682_v17  ;;  %v348_v15 = vrot.slane %v332_v12, %v347_v13 }
  0x48   :  { %937 = vmatpush1.bf16.msra.mxu1 %v1428_v35  ;;  %897 = vmatprep.subr.bf16.mxu0 %v1433_v36 }
  0x49   :  { %938 = vmatprep.subr.bf16.mxu1 %v1436_v37  ;;  %1120 = vperm.xlu1 %1381, %v331_v11   ;;  %v1516_v11 = vld [vmem:[#allocation5 + $0x230] ss:$12 sps:$4 sm:$0xff]  }
  0x4a   :  { %1382 = vset.pattern.permute.xlu0 %v1569_v1  ;;  %v80_v1 = vrot.slane %v67_v19, %v1685_v18  ;;  %v1055_v19 = vsub.s32 5, %v1679_v16 }
  0x4b   :  { %898 = vmatpush1.bf16.msra.mxu0 %v1431_v38 }
  0x4c   :  { %939 = vmatpush1.bf16.msra.mxu1 %v1434_v39  ;;  %899 = vmatprep.subr.bf16.mxu0 %v1439_v40 }
  0x4d   :  { %940 = vmatprep.subr.bf16.mxu1 %v1442_v41 }
  0x4f   :  { %900 = vmatpush1.bf16.msra.mxu0 %v1437_v42 }
  0x50   :  { %941 = vmatpush1.bf16.msra.mxu1 %v1440_v43  ;;  %901 = vmatprep.subr.bf16.mxu0 %v1445_v44  ;;  %v1487_v44 = vld [vmem:[#allocation5 + $0x8] ss:$12 sps:$4 sm:$0xff]  }
  0x51   :  { %942 = vmatprep.subr.bf16.mxu1 %v1448_v46 }
  0x53   :  { %902 = vmatpush1.bf16.msra.mxu0 %v1443_v45  ;;  %v1488_v45 = vld [vmem:[#allocation5 + $0x188] ss:$12 sps:$4 sm:$0xff]  }
  0x54   :  { %943 = vmatpush1.bf16.msra.mxu1 %v1446_v47  ;;  %903 = vmatprep.subr.bf16.mxu0 %v1451_v48  ;;  %v1489_v47 = vld [vmem:[#allocation5 + $0xe0] ss:$12 sps:$4 sm:$0xff]  }
  0x55   :  { %944 = vmatprep.subr.bf16.mxu1 %v1454_v49  ;;  %v1490_v48 = vld [vmem:[#allocation5 + $0x260] ss:$12 sps:$4 sm:$0xff]  }
  0x56   :  { %v1491_v49 = vld [vmem:[#allocation5 + $0x20] ss:$12 sps:$4 sm:$0xff]  }
  0x57   :  { %904 = vmatpush1.bf16.msra.mxu0 %v1449_v50  ;;  %v1492_v50 = vld [vmem:[#allocation5 + $0x1a0] ss:$12 sps:$4 sm:$0xff]  }
  0x58   :  { %945 = vmatpush1.bf16.msra.mxu1 %v1452_v51  ;;  %905 = vmatprep.subr.bf16.mxu0 %v1457_v52  ;;  %v1493_v51 = vld [vmem:[#allocation5 + $0xf8] ss:$12 sps:$4 sm:$0xff]  }
  0x59   :  { %946 = vmatprep.subr.bf16.mxu1 %v1460_v53  ;;  %v1494_v52 = vld [vmem:[#allocation5 + $0x278] ss:$12 sps:$4 sm:$0xff]  }
  0x5a   :  { %v1495_v53 = vld [vmem:[#allocation5 + $0x38] ss:$12 sps:$4 sm:$0xff]  }
  0x5b   :  { %906 = vmatpush1.bf16.msra.mxu0 %v1455_v54  ;;  %v1496_v54 = vld [vmem:[#allocation5 + $0x1b8] ss:$12 sps:$4 sm:$0xff]  }
  0x5c   :  { %947 = vmatpush1.bf16.msra.mxu1 %v1458_v55  ;;  %907 = vmatprep.subr.bf16.mxu0 %v1463_v56  ;;  %v1497_v55 = vld [vmem:[#allocation5 + $0x110] ss:$12 sps:$4 sm:$0xff]  }
  0x5d   :  { %948 = vmatprep.subr.bf16.mxu1 %v1466_v57  ;;  %v1498_v56 = vld [vmem:[#allocation5 + $0x290] ss:$12 sps:$4 sm:$0xff]  }
  0x5e   :  { %v1499_v57 = vld [vmem:[#allocation5 + $0x50] ss:$12 sps:$4 sm:$0xff]  }
  0x5f   :  { %908 = vmatpush1.bf16.msra.mxu0 %v1461_v58  ;;  %v1500_v58 = vld [vmem:[#allocation5 + $0x1d0] ss:$12 sps:$4 sm:$0xff]  }
  0x60   :  { %949 = vmatpush1.bf16.msra.mxu1 %v1464_v59  ;;  %909 = vmatprep.subr.bf16.mxu0 %v1469_v60  ;;  %v1501_v59 = vld [vmem:[#allocation5 + $0x128] ss:$12 sps:$4 sm:$0xff]  }
  0x61   :  { %950 = vmatprep.subr.bf16.mxu1 %v1472_v61  ;;  %v1502_v60 = vld [vmem:[#allocation5 + $0x2a8] ss:$12 sps:$4 sm:$0xff]  }
  0x62   :  { %v1503_v61 = vld [vmem:[#allocation5 + $0x68] ss:$12 sps:$4 sm:$0xff]  }
  0x63   :  { %910 = vmatpush1.bf16.msra.mxu0 %v1467_v62  ;;  %v1504_v62 = vld [vmem:[#allocation5 + $0x1e8] ss:$12 sps:$4 sm:$0xff]  }
  0x64   :  { %951 = vmatpush1.bf16.msra.mxu1 %v1470_v63  ;;  %911 = vmatprep.subr.bf16.mxu0 %v1475_v0  ;;  %v1505_v63 = vld [vmem:[#allocation5 + $0x140] ss:$12 sps:$4 sm:$0xff]  }
  0x65   :  { %952 = vmatprep.subr.bf16.mxu1 %v1478_v2  ;;  %v1506_v0 = vld [vmem:[#allocation5 + $0x2c0] ss:$12 sps:$4 sm:$0xff]  }
  0x66   :  { %v1507_v2 = vld [vmem:[#allocation5 + $0x80] ss:$12 sps:$4 sm:$0xff]  }
  0x67   :  { %912 = vmatpush1.bf16.msra.mxu0 %v1473_v3  ;;  %v1508_v3 = vld [vmem:[#allocation5 + $0x200] ss:$12 sps:$4 sm:$0xff]  }
  0x68   :  { %953 = vmatpush1.bf16.msra.mxu1 %v1476_v4  ;;  %913 = vmatprep.subr.bf16.mxu0 %v1481_v5  ;;  %v1509_v4 = vld [vmem:[#allocation5 + $0x158] ss:$12 sps:$4 sm:$0xff]  }
  0x69   :  { %954 = vmatprep.subr.bf16.mxu1 %v1484_v6  ;;  %v1510_v5 = vld [vmem:[#allocation5 + $0x2d8] ss:$12 sps:$4 sm:$0xff]  }
  0x6a   :  { %v1511_v6 = vld [vmem:[#allocation5 + $0x98] ss:$12 sps:$4 sm:$0xff]  }
  0x6b   :  { %914 = vmatpush1.bf16.msra.mxu0 %v1479_v7  ;;  %v1512_v7 = vld [vmem:[#allocation5 + $0x218] ss:$12 sps:$4 sm:$0xff]  }
  0x6c   :  { %955 = vmatpush1.bf16.msra.mxu1 %v1482_v8  ;;  %1326 = vmatprep.subr.bf16.mxu0 %v1485_v9  ;;  %v1513_v8 = vld [vmem:[#allocation5 + $0x170] ss:$12 sps:$4 sm:$0xff]  }
  0x6d   :  { %1348 = vmatprep.subr.bf16.mxu1 %v1486_v10  ;;  %v1514_v9 = vld [vmem:[#allocation5 + $0x2f0] ss:$12 sps:$4 sm:$0xff]  }
  0x6e   :  { %v1515_v10 = vld [vmem:[#allocation5 + $0xb0] ss:$12 sps:$4 sm:$0xff]  }
 0x101   :  { %v147_v25 = vpop.f32.mrb[0].mxu0 }
 0x102   :  { %v188_v26 = vpop.f32.mrb[0].mxu1  ;;  %v148_v27 = vadd.f32 %v147_v25, %v72_v22  ;;  %v149_v29 = vpop.f32.mrb[1].mxu0  ;;  %v1052_v25 = vrot.slane %v332_v12, %v1688_v20 }
 0x103   :  { %v189_v28 = vadd.f32 %v188_v26, %v80_v1  ;;  %v190_v30 = vpop.f32.mrb[1].mxu1  ;;  %v150_v31 = vadd.f32 %v149_v29, %v76_v23  ;;  %v151_v33 = vpop.f32.mrb[2].mxu0  ;;  %v1092_v1 = vsub.s32 6, %v1679_v16  ;;  %v359_v23 = vrot.slane %v344_v14, %v1682_v17 }
 0x104   :  { %v191_v32 = vadd.f32 %v190_v30, %v84_v24  ;;  %v192_v34 = vpop.f32.mrb[2].mxu1  ;;  %v195_v35 = vmax.f32 %v148_v27, 0.0  ;;  %v152_v37 = vpop.f32.mrb[3].mxu0  ;;  %v363_v26 = vrot.slane %v348_v15, %v1682_v17  ;;  %v1056_v27 = vrot.slane %v332_v12, %v1055_v19  ;;  %v333_v19 = vld [vmem:[%s1775_s5 + $0x8] sm:$0xf] }
 0x105   :  { %v197_v36 = vmax.f32 %v189_v28, 0.0  ;;  %v193_v38 = vpop.f32.mrb[3].mxu1  ;;  %v196_v39 = vmax.f32 %v150_v31, 0.0  ;;  %v1711_v22 = vpop.permute.xlu0 %336  ;;  %v1129_v28 = vsub.s32 7, %v1679_v16  ;;  %v1089_v29 = vrot.slane %v332_v12, %v1685_v18 }
 0x106   :  { %v198_v40 = vmax.f32 %v191_v32, 0.0  ;;  %v1699_v46 = vpack.c.bf16 %v195_v35, %v195_v35  ;;  %v1715_v24 = vpop.permute.xlu1 %1083  ;;  %v1093_v30 = vrot.slane %v332_v12, %v1092_v1  ;;  %v368_v31 = vmul.f32 %v359_v23, %v1711_v22 }
 0x107   :  { %v1697_v41 = vpack.c.bf16 %v197_v36, %v197_v36  ;;  %v200_v42 = vpack.c.bf16 %v196_v39, %v196_v39  ;;  %v1067_v32 = vrot.slane %v1052_v25, %v1688_v20  ;;  %v1126_v33 = vrot.slane %v332_v12, %v1691_v21 }
 0x108   :  { %v202_v43 = vpack.c.bf16 %v198_v40, %v198_v40  ;;  %v369_v34 = vmul.f32 %v363_v26, %v1711_v22  ;;  %v1071_v35 = vrot.slane %v1056_v27, %v1688_v20  ;;  %v1130_v37 = vrot.slane %v332_v12, %v1129_v28 }
 0x109   :  { %915 = vmatprep.mubr.bf16.mxu0 %v200_v42  ;;  %v1726_v36 = vpop.permute.xlu0 %1046  ;;  %v1104_v38 = vrot.slane %v1089_v29, %v1685_v18  ;;  %v352_v1 = vrot.slane %v333_v19, %v1682_v17  ;;  %v1060_v25 = vrot.slane %v333_v19, %v1688_v20  ;;  %v1097_v26 = vrot.slane %v333_v19, %v1685_v18 }
 0x10a   :  { %956 = vmatprep.mubr.bf16.mxu1 %v202_v43  ;;  %916 = vmatmul.mubr.bf16.vlgmr.msra.gmra.mrb[4].mxu0 %v1699_v46  ;;  %v1729_v39 = vpop.permute.xlu1 %1120 }
 0x10b   :  { %957 = vmatmul.mubr.bf16.vlgmr.msra.gmra.mrb[4].mxu1 %v1697_v41  ;;  %1327 = vmatpush3.bf16.msra.mxu0 %v1487_v44  ;;  %v367_v23 = vrot.slane %v352_v1, %v1682_v17 }
 0x10c   :  { %1349 = vmatpush3.bf16.msra.mxu1 %v1488_v45  ;;  %997 = vmatprep.mubr.bf16.mxu0 %v200_v42  ;;  %v1076_v45 = vmul.f32 %v1067_v32, %v1726_v36  ;;  %v1075_v32 = vrot.slane %v1060_v25, %v1688_v20 }
 0x10d   :  { %1037 = vmatprep.mubr.bf16.mxu1 %v202_v43  ;;  %1328 = vmatprep.subr.bf16.mxu0 %v1489_v47  ;;  %v370_v29 = vmul.f32 %v367_v23, %v1711_v22 }
 0x10e   :  { %1350 = vmatprep.subr.bf16.mxu1 %v1490_v48  ;;  %v1077_v48 = vmul.f32 %v1071_v35, %v1726_v36 }
 0x10f   :  { %1329 = vmatpush3.bf16.msra.mxu0 %v1491_v49 }
 0x110   :  { %1351 = vmatpush3.bf16.msra.mxu1 %v1492_v50  ;;  %1330 = vmatprep.subr.bf16.mxu0 %v1493_v51  ;;  %v1145_v51 = vrot.slane %v1130_v37, %v1691_v21 }
 0x111   :  { %1352 = vmatprep.subr.bf16.mxu1 %v1494_v52 }
 0x113   :  { %1331 = vmatpush3.bf16.msra.mxu0 %v1495_v53  ;;  %v1113_v53 = vmul.f32 %v1104_v38, %v1715_v24 }
 0x114   :  { %1353 = vmatpush3.bf16.msra.mxu1 %v1496_v54  ;;  %1332 = vmatprep.subr.bf16.mxu0 %v1497_v55 }
 0x115   :  { %1354 = vmatprep.subr.bf16.mxu1 %v1498_v56 }
 0x117   :  { %1333 = vmatpush3.bf16.msra.mxu0 %v1499_v57 }
 0x118   :  { %1355 = vmatpush3.bf16.msra.mxu1 %v1500_v58  ;;  %1334 = vmatprep.subr.bf16.mxu0 %v1501_v59  ;;  %v1156_v58 = vld [vmem:[%s1776_s6] sm:$0x7] }
 0x119   :  { %1356 = vmatprep.subr.bf16.mxu1 %v1502_v60 }
 0x11b   :  { %1335 = vmatpush3.bf16.msra.mxu0 %v1503_v61 }
 0x11c   :  { %1357 = vmatpush3.bf16.msra.mxu1 %v1504_v62  ;;  %1336 = vmatprep.subr.bf16.mxu0 %v1505_v63  ;;  %v1151_v62 = vmul.f32 %v1145_v51, %v1729_v39  ;;  %v1161_v63 = vrot.slane %v1156_v58, %v1682_v17 }
 0x11d   :  { %1358 = vmatprep.subr.bf16.mxu1 %v1506_v0 }
 0x11f   :  { %1337 = vmatpush3.bf16.msra.mxu0 %v1507_v2  ;;  %v1165_v2 = vrot.slane %v1156_v58, %v1688_v20 }
 0x120   :  { %1359 = vmatpush3.bf16.msra.mxu1 %v1508_v3  ;;  %1338 = vmatprep.subr.bf16.mxu0 %v1509_v4  ;;  %v1179_v4 = vld [vmem:[%s1777_s7] sm:$0x7] }
 0x121   :  { %1360 = vmatprep.subr.bf16.mxu1 %v1510_v5 }
 0x123   :  { %1339 = vmatpush3.bf16.msra.mxu0 %v1511_v6 }
 0x124   :  { %1361 = vmatpush3.bf16.msra.mxu1 %v1512_v7  ;;  %1340 = vmatprep.subr.bf16.mxu0 %v1513_v8  ;;  %v1184_v8 = vrot.slane %v1179_v4, %v1682_v17 }
 0x125   :  { %1362 = vmatprep.subr.bf16.mxu1 %v1514_v9 }
 0x127   :  { %1341 = vmatpush3.bf16.msra.mxu0 %v1515_v10  ;;  %v1188_v10 = vrot.slane %v1179_v4, %v1688_v20 }
 0x128   :  { %1363 = vmatpush3.bf16.msra.mxu1 %v1516_v11 }
 0x12a   :  { %998 = vmatmul.mubr.bf16.vlgmr.msra.gmra.mrb[8].mxu0 %v1699_v46  ;;  %v1141_v46 = vrot.slane %v1126_v33, %v1691_v21  ;;  %v1134_v33 = vrot.slane %v333_v19, %v1691_v21 }
 0x12b   :  { %1038 = vmatmul.mubr.bf16.vlgmr.msra.gmra.mrb[8].mxu1 %v1697_v41  ;;  %v1108_v41 = vrot.slane %v1093_v30, %v1685_v18 }
 0x12c   :  { %v1150_v60 = vmul.f32 %v1141_v46, %v1729_v39 }
 0x12d   :  { %v1114_v57 = vmul.f32 %v1108_v41, %v1715_v24 }
 0x1dd   :  { %v917_v16 = vpop.f32.mrb[4].mxu0 }
 0x1de   :  { %v958_v40 = vpop.f32.mrb[4].mxu1  ;;  %v918_v42 = vadd.f32 %v917_v16, %v368_v31  ;;  %v919_v43 = vpop.f32.mrb[5].mxu0 }
 0x1df   :  { %v960_v44 = vpop.f32.mrb[5].mxu1  ;;  %v920_v47 = vadd.f32 %v919_v43, %v369_v34  ;;  %v921_v49 = vpop.f32.mrb[6].mxu0  ;;  %v1149_v43 = vrot.slane %v1134_v33, %v1691_v21 }
 0x1e0   :  { %v962_v50 = vpop.f32.mrb[6].mxu1  ;;  %v959_v52 = vadd.f32 %v958_v40, %v918_v42  ;;  %v922_v54 = vpop.f32.mrb[7].mxu0  ;;  %v1112_v40 = vrot.slane %v1097_v26, %v1685_v18  ;;  %v1078_v42 = vmul.f32 %v1075_v32, %v1726_v36  ;;  %v1325_v36 = vld [vmem:[#allocation2] ss:$0 sm:$0xff] }
 0x1e1   :  { %v963_v55 = vpop.f32.mrb[7].mxu1  ;;  %v961_v56 = vadd.f32 %v960_v44, %v920_v47  ;;  %v1152_v20 = vmul.f32 %v1149_v43, %v1729_v39  ;;  %v1169_v47 = vrot.slane %v1156_v58, %v1685_v18  ;;  %v1192_v50 = vrot.slane %v1179_v4, %v1685_v18 }
 0x1e2   :  { %v1079_v59 = vadd.f32 %v1076_v45, %v959_v52  ;;  %v1115_v44 = vmul.f32 %v1112_v40, %v1715_v24 }
 0x1e3   :  { %v1080_v61 = vadd.f32 %v1077_v48, %v961_v56 }
 0x1e4   :  { %v1116_v0 = vadd.f32 %v1113_v53, %v1079_v59 }
 0x1e5   :  { %v1117_v3 = vadd.f32 %v1114_v57, %v1080_v61 }
 0x1e6   :  { %v1153_v5 = vadd.f32 %v1150_v60, %v1116_v0 }
 0x1e7   :  { %v1154_v6 = vadd.f32 %v1151_v62, %v1117_v3 }
 0x1e8   :  { %v1173_v7 = vadd.f32 %v1161_v63, %v1153_v5 }
 0x1e9   :  { %v1174_v9 = vadd.f32 %v1165_v2, %v1154_v6 }
 0x1ea   :  { %v1176_v11 = vmax.f32 %v1173_v7, 0.0 }
 0x1eb   :  { %v1177_v12 = vmax.f32 %v1174_v9, 0.0 }
 0x1ec   :  { %v1196_v13 = vmul.f32 %v1184_v8, %v1176_v11 }
 0x1ed   :  { %v1197_v14 = vmul.f32 %v1188_v10, %v1177_v12 }
 0x1ef   :  { %v1199_v15 = vadd.f32 %v1197_v14, %v1196_v13 }
 0x1fd   :  { %v1342_v27 = vpop.f32.mrb[8].mxu0 }
 0x1fe   :  { %v1364_v28 = vpop.f32.mrb[8].mxu1  ;;  %v1343_v30 = vpop.f32.mrb[9].mxu0 }
 0x1ff   :  { %v1365_v31 = vpop.f32.mrb[9].mxu1  ;;  %v1344_v34 = vadd.f32 %v1343_v30, %v1342_v27  ;;  %v1345_v37 = vpop.f32.mrb[10].mxu0 }
 0x200   :  { %v1366_v35 = vadd.f32 %v1365_v31, %v1364_v28  ;;  %v1367_v38 = vpop.f32.mrb[10].mxu1  ;;  %v1346_v16 = vpop.f32.mrb[11].mxu0 }
 0x201   :  { %v1368_v17 = vpop.f32.mrb[11].mxu1  ;;  %v1000_v41 = vadd.f32 %v1344_v34, %v370_v29 }
 0x203   :  { %v1040_v22 = vadd.f32 %v1366_v35, %v1000_v41 }
 0x205   :  { %v1081_v45 = vadd.f32 %v1078_v42, %v1040_v22 }
 0x207   :  { %v1118_v46 = vadd.f32 %v1115_v44, %v1081_v45 }
 0x209   :  { %v1155_v48 = vadd.f32 %v1152_v20, %v1118_v46 }
 0x20b   :  { %v1175_v49 = vadd.f32 %v1169_v47, %v1155_v48 }
 0x20d   :  { %v1178_v51 = vmax.f32 %v1175_v49, 0.0 }
 0x20f   :  { %v1198_v52 = vmul.f32 %v1192_v50, %v1178_v51 }
 0x211   :  { %v1200_v53 = vadd.f32 %v1199_v15, %v1198_v52 }
 0x213   :  { %1201 = vadd.xlane.f32.xlu1 %v1200_v53 }
 0x2a0   :  { %v1202_v54 = vpop.xlane.xlu1 %1201 }
 0x2a1   :  { %v1210_v21 = vadd.f32 %v1325_v36, %v1202_v54 }
 0x2a3   :  { %1213 = vperm.xlu0 %1382, %v1210_v21  }
 0x322   :  { %v1214_v55 = vpop.permute.xlu0 %1213 }
 0x323   :  { %1216 = vst [vmem:[%s1779_s9] sm:$0xff] %v1214_v55 }
 0x324   :  { %1221 = vsyncpa [#allocation4], 1 }
 0x325   :  { %1222 = vsyncpa [#allocation6], 1 }

</bundles_post_ra>
